<compile_context>
chip_gen: v7x
topology: tpu7x:2x2x1
jax: 0.10.0
libtpu: 0.0.40
codegen_flags: <defaults>
</compile_context>

<pallas_src>
import functools

import jax
import jax.numpy as jnp
from jax.experimental import pallas as pl
from jax.experimental.pallas import tpu as pltpu


def _round_up(n: int, m: int) -> int:
    return ((n + m - 1) // m) * m


def critic_kernel(x_ref, w1a_ref, w2_ref, b2_ref, o_ref):
    """One batch tile of the critic forward pass.

    x_ref   : (TB, IN)      raw rows of x, exactly as stored in HBM
    w1a_ref : (HID, IN + 1) layer-1 weight with b1 folded in as the last column
    w2_ref  : (OUT, HID)    layer-2 weight
    b2_ref  : (1, 1)        layer-2 bias (SMEM scalar)
    o_ref   : (OUT, TB)     lane-dense output tile (batch on the lane axis)
    """
    tb = x_ref.shape[0]

    # Append the constant-1 feature so b1 rides inside the MXU contraction
    # (K: 3 -> 4); the (HID, TB) bias add on the VPU disappears.
    ones = jnp.ones((tb, 1), dtype=x_ref.dtype)
    xa = jnp.concatenate([x_ref[...], ones], axis=1)          # (TB, IN+1)
    xa = xa.astype(w1a_ref.dtype)                             # bf16 iff enabled

    # Layer 1 on the MXU: W1a @ xa^T -> (HID, TB).  The small (TB, 4) operand
    # is fed transposed; the relayout happens on-chip instead of as a
    # materialized HBM transpose in the wrapper.  f32 accumulation.
    h = jnp.dot(w1a_ref[...], xa.T, preferred_element_type=jnp.float32)
    h = jnp.maximum(h, 0.0)                                   # ReLU only

    # Layer 2: (OUT, HID) @ (HID, TB) -> (OUT, TB); unmasked 128-lane stores.
    o = jnp.dot(w2_ref[...], h.astype(w2_ref.dtype),
                preferred_element_type=jnp.float32)
    o_ref[...] = (o + b2_ref[0, 0]).astype(o_ref.dtype)


@functools.partial(jax.jit, static_argnames=("tile_b", "use_bf16"))
def critic_forward(x, w1, b1, w2, b2, *, tile_b=8192, use_bf16=False):
    """Forward pass matching PyTorch Critic_NN.forward.

    x  : (B, IN) float32
    w1 : (HID, IN)   (PyTorch nn.Linear (out, in) layout)
    b1 : (HID,)
    w2 : (OUT, HID)
    b2 : (OUT,)      (OUT == 1)
    Returns (B, OUT) float32.

    use_bf16=True runs the MXU in bf16 (f32 accumulation): fewer MXU passes on
    all generations, ~1e-3 relative error instead of ~1e-7.
    """
    B, in_dim = x.shape
    hid = w1.shape[0]
    out_dim = w2.shape[0]

    # --- Batch tiling (balanced, capped, >=2 even tiles when possible) ------
    tile_b = max(128, min(int(tile_b), 16384))     # VMEM-safe cap, see header
    n_tiles = max(1, pl.cdiv(B, tile_b))
    if n_tiles == 1 and B >= 256:
        n_tiles = 2                                # engage both TCs on v7x
    if n_tiles > 1 and n_tiles % 2 != 0:
        n_tiles += 1                               # even split across 2 TCs
    tb = _round_up(pl.cdiv(B, n_tiles), 128)       # balanced, lane-aligned
    n_tiles = pl.cdiv(B, tb)

    # --- Parameter prep (tiny arrays, traced once) ---------------------------
    compute_dtype = jnp.bfloat16 if use_bf16 else jnp.float32
    w1a = jnp.concatenate(
        [w1.astype(jnp.float32), b1.astype(jnp.float32).reshape(hid, 1)],
        axis=1).astype(compute_dtype)              # (HID, IN+1), b1 folded in
    w2c = w2.astype(compute_dtype)                 # (OUT, HID)
    b2s = b2.astype(jnp.float32).reshape(1, 1)     # scalar -> SMEM
    xf = x.astype(jnp.float32)                     # NO transpose, NO pad

    out = pl.pallas_call(
        critic_kernel,
        out_shape=jax.ShapeDtypeStruct((out_dim, B), jnp.float32),
        grid=(n_tiles,),
        in_specs=[
            # Raw (TB, IN) row blocks of x; last block may be partial (clipped
            # DMA; garbage rows only feed output lanes that are never written).
            pl.BlockSpec((tb, in_dim), lambda i: (i, 0)),
            # Weights: constant index_map -> fetched once, VMEM-resident.
            pl.BlockSpec((hid, in_dim + 1), lambda i: (0, 0)),
            pl.BlockSpec((out_dim, hid), lambda i: (0, 0)),
            # b2 scalar lives in SMEM.
            pl.BlockSpec(memory_space=pltpu.MemorySpace.SMEM),
        ],
        # Lane-dense output tile: batch on the 128-wide lane axis.
        out_specs=pl.BlockSpec((out_dim, tb), lambda i: (0, i)),
        compiler_params=pltpu.CompilerParams(
            dimension_semantics=("parallel",),     # batch tiles independent
            vmem_limit_bytes=32 * 1024 * 1024,
        ),
    )(xf, w1a, w2c, b2s)

    # (OUT, B) -> (B, OUT).  For OUT == 1 this is a degenerate-dim reshape
    # (pure bitcast, no transpose), and there is no padding to slice away.
    if out_dim == 1:
        return out.reshape(B, 1)
    return out.T


def init_params(key, input_size=3, n_hiddens=56, n_outputs=1):
    """Deterministic init mimicking nn.Linear (uniform +/- 1/sqrt(fan_in)),
    stored in PyTorch layout: weight (out, in), bias (out,)."""
    k1, k2, k3, k4 = jax.random.split(key, 4)
    bound1 = 1.0 / jnp.sqrt(jnp.float32(input_size))
    bound2 = 1.0 / jnp.sqrt(jnp.float32(n_hiddens))
    w1 = jax.random.uniform(k1, (n_hiddens, input_size), jnp.float32, -bound1, bound1)
    b1 = jax.random.uniform(k2, (n_hiddens,), jnp.float32, -bound1, bound1)
    w2 = jax.random.uniform(k3, (n_outputs, n_hiddens), jnp.float32, -bound2, bound2)
    b2 = jax.random.uniform(k4, (n_outputs,), jnp.float32, -bound2, bound2)
    return w1, b1, w2, b2


if __name__ == "__main__":
    key = jax.random.PRNGKey(0)
    kp, kx1, kx2 = jax.random.split(key, 3)

    input_size, n_hiddens, n_outputs = 3, 56, 1
    w1, b1, w2, b2 = init_params(kp, input_size, n_hiddens, n_outputs)

    def ref_forward(x):
        return jnp.maximum(x @ w1.T + b1, 0.0) @ w2.T + b2

    # 1) Tiny batch (single tile), the typical per-step critic call.
    B1 = 8
    x1 = jax.random.normal(kx1, (B1, input_size), jnp.float32)
    out1 = jax.block_until_ready(critic_forward(x1, w1, b1, w2, b2))
    assert out1.shape == (B1, n_outputs)
    assert jnp.allclose(out1, ref_forward(x1), atol=2e-5, rtol=2e-5)

    # 2) Ragged multi-tile batch: balanced 2-tile "parallel" grid (256 + 44),
    #    exercising the no-pad / no-transpose input path end to end.
    B2 = 300
    x2 = jax.random.normal(kx2, (B2, input_size), jnp.float32)
    out2 = jax.block_until_ready(critic_forward(x2, w1, b1, w2, b2))
    assert out2.shape == (B2, n_outputs)
    assert jnp.allclose(out2, ref_forward(x2), atol=2e-5, rtol=2e-5)

    # 3) Optional bf16 MXU path (looser tolerance by design).
    out3 = jax.block_until_ready(critic_forward(x2, w1, b1, w2, b2, use_bf16=True))
    assert jnp.allclose(out3, ref_forward(x2), atol=5e-2, rtol=5e-2)

    # TODO(synk): Critic_NN.GAE is a sequential per-timestep recursion over
    # Python lists (not part of forward()); it belongs in a lax.scan outside
    # the kernel rather than in Pallas.
    print("KERNEL_OK")
</pallas_src>

<mosaic_0001>
module attributes {stable_mosaic.version = 11 : i64} {
  func.func @critic_kernel(%arg0: i32, %arg1: memref<128x3xf32, #tpu.memory_space<vmem>>, %arg2: memref<56x4xf32, #tpu.memory_space<vmem>>, %arg3: memref<1x56xf32, #tpu.memory_space<vmem>>, %arg4: memref<1x1xf32, #tpu.memory_space<smem>>, %arg5: memref<1x128xf32, #tpu.memory_space<vmem>>) attributes {dimension_semantics = [#tpu.dimension_semantics<parallel>], iteration_bounds = array<i64: 1>, scalar_prefetch = 0 : i64, scratch_operands = 0 : i64, tpu.core_type = #tpu.core_type<tc>, window_params = [{transform_indices = @transform_0, window_bounds = array<i64: 128, 3>}, {pipeline_mode = #tpu.pipeline_mode<synchronous>, transform_indices = @transform_1, window_bounds = array<i64: 56, 4>}, {pipeline_mode = #tpu.pipeline_mode<synchronous>, transform_indices = @transform_2, window_bounds = array<i64: 1, 56>}, {transform_indices = @transform_3, window_bounds = array<i64: 1, 1>}, {transform_indices = @transform_4, window_bounds = array<i64: 1, 128>}]} {
    %cst = arith.constant 1.000000e+00 : f32
    %0 = vector.broadcast %cst : f32 to vector<128x1xf32>
    %c0 = arith.constant 0 : index
    %c0_0 = arith.constant 0 : index
    %1 = vector.load %arg1[%c0, %c0_0] : memref<128x3xf32, #tpu.memory_space<vmem>>, vector<128x3xf32>
    %2 = tpu.concatenate %1, %0 in 1 : vector<128x3xf32>, vector<128x1xf32> -> vector<128x4xf32>
    %c0_1 = arith.constant 0 : index
    %c0_2 = arith.constant 0 : index
    %3 = vector.load %arg2[%c0_1, %c0_2] : memref<56x4xf32, #tpu.memory_space<vmem>>, vector<56x4xf32>
    %4 = tpu.transpose %2, [1, 0] : vector<128x4xf32> -> vector<4x128xf32>
    %cst_3 = arith.constant dense<0.000000e+00> : vector<56x128xf32>
    %5 = tpu.matmul %3, %4, %cst_3 {dimension_numbers = #tpu.dot_dimension_numbers<[1], [0], [0], [1], [0, 0, 1, 1], [], []>} : vector<56x4xf32>, vector<4x128xf32>, vector<56x128xf32> -> vector<56x128xf32>
    %cst_4 = arith.constant 0.000000e+00 : f32
    %6 = vector.broadcast %cst_4 : f32 to vector<56x128xf32>
    %7 = arith.maximumf %5, %6 : vector<56x128xf32>
    %c0_5 = arith.constant 0 : index
    %c0_6 = arith.constant 0 : index
    %8 = vector.load %arg3[%c0_5, %c0_6] : memref<1x56xf32, #tpu.memory_space<vmem>>, vector<1x56xf32>
    %cst_7 = arith.constant dense<0.000000e+00> : vector<1x128xf32>
    %9 = tpu.matmul %8, %7, %cst_7 {dimension_numbers = #tpu.dot_dimension_numbers<[1], [0], [0], [1], [0, 0, 1, 1], [], []>} : vector<1x56xf32>, vector<56x128xf32>, vector<1x128xf32> -> vector<1x128xf32>
    %c0_8 = arith.constant 0 : index
    %c0_9 = arith.constant 0 : index
    %10 = memref.load %arg4[%c0_8, %c0_9] : memref<1x1xf32, #tpu.memory_space<smem>>
    %11 = vector.broadcast %10 : f32 to vector<1x128xf32>
    %12 = arith.addf %9, %11 : vector<1x128xf32>
    %c0_10 = arith.constant 0 : index
    %c0_11 = arith.constant 0 : index
    %13 = vector.load %arg5[%c0_10, %c0_11] : memref<1x128xf32, #tpu.memory_space<vmem>>, vector<1x128xf32>
    tpu.vector_store %arg5[%c0_10, %c0_11], %12 {strides = array<i32>} : memref<1x128xf32, #tpu.memory_space<vmem>>, vector<1x128xf32>,
    return
  }
  func.func @transform_0(%arg0: i32) -> (i32, i32) {
    %c0_i32 = arith.constant 0 : i32
    %c0_i32_0 = arith.constant 0 : i32
    return %arg0, %c0_i32 : i32, i32
  }
  func.func @transform_1(%arg0: i32) -> (i32, i32) {
    %c0_i32 = arith.constant 0 : i32
    %c0_i32_0 = arith.constant 0 : i32
    %c0_i32_1 = arith.constant 0 : i32
    return %c0_i32, %c0_i32_0 : i32, i32
  }
  func.func @transform_2(%arg0: i32) -> (i32, i32) {
    %c0_i32 = arith.constant 0 : i32
    %c0_i32_0 = arith.constant 0 : i32
    %c0_i32_1 = arith.constant 0 : i32
    return %c0_i32, %c0_i32_0 : i32, i32
  }
  func.func @transform_3(%arg0: i32) -> (i32, i32) {
    %c0_i32 = arith.constant 0 : i32
    %c0_i32_0 = arith.constant 0 : i32
    %c0_i32_1 = arith.constant 0 : i32
    return %c0_i32, %c0_i32_0 : i32, i32
  }
  func.func @transform_4(%arg0: i32) -> (i32, i32) {
    %c0_i32 = arith.constant 0 : i32
    %c0_i32_0 = arith.constant 0 : i32
    return %c0_i32, %arg0 : i32, i32
  }
}

</mosaic_0001>

<bundles_post_ra>
// kernel: critic_forward.1
= control target key start
LH: loop header
LB: loop body
LE: loop exit
PB: predicated region body
PF: predicated region fallthrough
CT: control target
= control target key end

     0   :  { %vm35_vm0 = vcmask 23552   ;;  %vm59_vm1 = vcmask 31744   ;;  %v522_v2 = vmov 0.0|0.0   ;;  %vm523_vm3 = vmmov 0   ;;  %s711_s0 = inlined_call_operand.vmem [shape: f32[8,3], index: 0, kind: input, shape index: {}]   ;;  %s712_s1 = inlined_call_operand.vmem [shape: f32[56,4], index: 1, kind: input, shape index: {}]   ;;  %s713_s2 = inlined_call_operand.vmem [shape: f32[1,56], index: 2, kind: input, shape index: {}]   ;;  %s714_s3 = inlined_call_operand.<no memory space> [shape: f32[1,1], index: 3, kind: input, shape index: {}]   ;;  %s715_s4 = inlined_call_operand.hbm [shape: f32[1,8], index: 4, kind: output, shape index: {}]  }
   0x1   :  { %v19_v0 = vld [vmem:[%s711_s0] sm:$0xff]  ;;  %v20_v1 = vld [vmem:[%s711_s0 + $0x8] sm:$0xff]  ;;  %453 = vmatprep.subr.bf16.mxu0 %v522_v2  ;;  %vm562_vm2 = vmpackc.low %vm59_vm1, %vm59_vm1  ;;  %485 = vmatprep.subr.bf16.mxu1 %v522_v2  ;;  %v524_v9 = vmov 0.0  }
   0x2   :  { %v36_v3 = vsel %vm35_vm0, %v19_v0, 1.0  ;;  %v37_v4 = vsel %vm35_vm0, %v20_v1, 1.0  ;;  %v21_v7 = vld [vmem:[%s711_s0 + $0x10] sm:$0xff]  ;;  %v22_v8 = vld [vmem:[%s711_s0 + $0x18] sm:$0xff]  ;;  %415 = vmatprep.mubr.msk.f32.mxu0 %vm523_vm3, %v524_v9  ;;  %450 = vmatprep.mubr.msk.f32.mxu1 %vm523_vm3, %v524_v9 }
   0x3   :  { %v454_v6 = vpack.c.bf16 %v37_v4, %v36_v3  ;;  %v38_v10 = vsel %vm35_vm0, %v21_v7, 1.0  ;;  %v39_v11 = vsel %vm35_vm0, %v22_v8, 1.0 }
   0x4   :  { %v458_v12 = vpack.c.bf16 %v39_v11, %v38_v10 }
   0x5   :  { %456 = vmatpush3.bf16.xpose.msk.msra.mxu0 %vm562_vm2, %v454_v6 }
   0x6   :  { %457 = vmatprep.subr.bf16.mxu0 %v522_v2 }
   0x7   :  { %10 = vsyncpa [#allocation4], 0  ;;  %v23_v13 = vld [vmem:[%s711_s0 + $0x20] sm:$0xff]  ;;  %v24_v14 = vld [vmem:[%s711_s0 + $0x28] sm:$0xff]  ;;  %vm239_vm4 = vcmask 457728   ;;  %s525_s11 = smov [#allocation3]  }
   0x8   :  { %v40_v15 = vsel %vm35_vm0, %v23_v13, 1.0  ;;  %v41_v16 = vsel %vm35_vm0, %v24_v14, 1.0  ;;  %v25_v18 = vld [vmem:[%s711_s0 + $0x30] sm:$0xff]  ;;  %v26_v19 = vld [vmem:[%s711_s0 + $0x38] sm:$0xff]  ;;  %v27_v23 = vld [vmem:[%s711_s0 + $0x40] sm:$0xff]  ;;  %s320_s12 = sshll.u32 %s525_s11, 4  ;;  %s321_s12 = int_to_ptr.vmem [resolvable:$true] %s320_s12 }
   0x9   :  { %v462_v17 = vpack.c.bf16 %v41_v16, %v40_v15  ;;  %v42_v20 = vsel %vm35_vm0, %v25_v18, 1.0  ;;  %v43_v21 = vsel %vm35_vm0, %v26_v19, 1.0  ;;  %v28_v24 = vld [vmem:[%s711_s0 + $0x48] sm:$0xff]  ;;  %v44_v25 = vsel %vm35_vm0, %v27_v23, 1.0  ;;  %v29_v28 = vld [vmem:[%s711_s0 + $0x50] sm:$0xff]  ;;  %v30_v29 = vld [vmem:[%s711_s0 + $0x58] sm:$0xff]  ;;  %p503_p1 = scmp.lt.s32.totalorder %s321_s12, %s321_s12 }
   0xa   :  { %v466_v22 = vpack.c.bf16 %v43_v21, %v42_v20  ;;  %v45_v26 = vsel %vm35_vm0, %v28_v24, 1.0  ;;  %v46_v30 = vsel %vm35_vm0, %v29_v28, 1.0  ;;  %v47_v31 = vsel %vm35_vm0, %v30_v29, 1.0  ;;  %v31_v33 = vld [vmem:[%s711_s0 + $0x60] sm:$0xff]  ;;  %v32_v34 = vld [vmem:[%s711_s0 + $0x68] sm:$0xff]  ;;  %v33_v38 = vld [vmem:[%s711_s0 + $0x70] sm:$0xff] }
   0xb   :  { %v470_v27 = vpack.c.bf16 %v45_v26, %v44_v25  ;;  %v474_v32 = vpack.c.bf16 %v47_v31, %v46_v30  ;;  %v48_v35 = vsel %vm35_vm0, %v31_v33, 1.0  ;;  %v49_v36 = vsel %vm35_vm0, %v32_v34, 1.0  ;;  %v34_v39 = vld [vmem:[%s711_s0 + $0x78] sm:$0xff]  ;;  %v52_v43 = vld [vmem:[%s712_s1] sm:$0xff]  ;;  %v53_v44 = vld [vmem:[%s712_s1 + $0x8] sm:$0xff]  ;;  %s498_s13 = scalar_lea.vmem %s321_s12, 16 }
   0xc   :  { %v478_v37 = vpack.c.bf16 %v49_v36, %v48_v35  ;;  %v50_v40 = vsel %vm35_vm0, %v33_v38, 1.0  ;;  %v51_v41 = vsel %vm35_vm0, %v34_v39, 1.0  ;;  %v54_v45 = vld [vmem:[%s712_s1 + $0x10] sm:$0xff]  ;;  %v55_v46 = vld [vmem:[%s712_s1 + $0x18] sm:$0xff]  ;;  %v56_v47 = vld [vmem:[%s712_s1 + $0x20] sm:$0xff]  ;;  %p499_p0 = scmp.ne.s32.totalorder %s321_s12, %s498_s13  ;;  %s502_s14 = scalar_lea.vmem %s321_s12, 32 }
   0xd   :  { %460 = vmatpush3.bf16.xpose.msk.msra.mxu0 %vm562_vm2, %v458_v12  ;;  %v482_v42 = vpack.c.bf16 %v51_v41, %v50_v40  ;;  %v57_v48 = vld [vmem:[%s712_s1 + $0x28] sm:$0xff]  ;;  %v58_v49 = vld [vmem:[%s712_s1 + $0x30] sm:$0xff]  ;;  %v236_v12 = vld [vmem:[%s713_s2] sm:$0x1]  ;;  %p504_p2 = scmp.lt.s32.totalorder %s502_s14, %s498_s13 }
   0xe   :  { %461 = vmatprep.subr.bf16.mxu0 %v522_v2 }
   0xf   :  { %p505_p3 = por %p504_p2, %p503_p1 }
  0x11   :  { %p506_p4 = pnand %p505_p3, %p499_p0 }
  0x15   :  { %464 = vmatpush3.bf16.xpose.msk.msra.mxu0 %vm562_vm2, %v462_v17 }
  0x16   :  { %465 = vmatprep.subr.bf16.mxu0 %v522_v2 }
  0x1d   :  { %468 = vmatpush3.bf16.xpose.msk.msra.mxu0 %vm562_vm2, %v466_v22 }
  0x1e   :  { %469 = vmatprep.subr.bf16.mxu0 %v522_v2 }
  0x25   :  { %472 = vmatpush3.bf16.xpose.msk.msra.mxu0 %vm562_vm2, %v470_v27 }
  0x26   :  { %473 = vmatprep.subr.bf16.mxu0 %v522_v2 }
  0x2d   :  { %476 = vmatpush3.bf16.xpose.msk.msra.mxu0 %vm562_vm2, %v474_v32 }
  0x2e   :  { %477 = vmatprep.subr.bf16.mxu0 %v522_v2 }
  0x35   :  { %480 = vmatpush3.bf16.xpose.msk.msra.mxu0 %vm562_vm2, %v478_v37 }
  0x36   :  { %481 = vmatprep.subr.bf16.mxu0 %v522_v2 }
  0x3d   :  { %484 = vmatpush3.bf16.xpose.msk.msra.mxu0 %vm562_vm2, %v482_v42 }
  0x44   :  { %416 = vmatmul.mubr.msk.f32.vlgmr.msra.gmra.mrb[0].mxu0 %vm59_vm1, %v52_v43 }
  0x45   :  { %418 = vmatprep.mubr.msk.f32.mxu0 %vm523_vm3, %v524_v9 }
  0x48   :  { %419 = vmatmul.mubr.msk.f32.gmra.mrb[2].mxu0 %vm59_vm1, %v53_v44 }
  0x49   :  { %421 = vmatprep.mubr.msk.f32.mxu0 %vm523_vm3, %v524_v9 }
  0x4c   :  { %422 = vmatmul.mubr.msk.f32.gmra.mrb[4].mxu0 %vm59_vm1, %v54_v45 }
  0x4d   :  { %424 = vmatprep.mubr.msk.f32.mxu0 %vm523_vm3, %v524_v9 }
  0x50   :  { %425 = vmatmul.mubr.msk.f32.gmra.mrb[6].mxu0 %vm59_vm1, %v55_v46 }
  0x51   :  { %427 = vmatprep.mubr.msk.f32.mxu0 %vm523_vm3, %v524_v9 }
  0x54   :  { %428 = vmatmul.mubr.msk.f32.gmra.mrb[8].mxu0 %vm59_vm1, %v56_v47 }
  0x55   :  { %430 = vmatprep.mubr.msk.f32.mxu0 %vm523_vm3, %v524_v9 }
  0x58   :  { %431 = vmatmul.mubr.msk.f32.gmra.mrb[10].mxu0 %vm59_vm1, %v57_v48 }
  0x59   :  { %433 = vmatprep.mubr.msk.f32.mxu0 %vm523_vm3, %v524_v9 }
  0x5c   :  { %434 = vmatmul.mubr.msk.f32.gmra.mrb[12].mxu0 %vm59_vm1, %v58_v49 }
 0x117   :  { %v195_v50 = vpop.f32.mrb[0].mxu0 }
 0x118   :  { %v417_v51 = vpop.f32.mrb[1].mxu0  ;;  %v229_v53 = vmax.f32 %v195_v50, 0.0 }
 0x11b   :  { %v200_v52 = vpop.f32.mrb[2].mxu0 }
 0x11c   :  { %v230_v54 = vmax.f32 %v200_v52, 0.0  ;;  %v420_v55 = vpop.f32.mrb[3].mxu0 }
 0x11e   :  { %v486_v56 = vpack.c.bf16 %v230_v54, %v229_v53 }
 0x11f   :  { %v205_v57 = vpop.f32.mrb[4].mxu0 }
 0x120   :  { %v423_v58 = vpop.f32.mrb[5].mxu0  ;;  %487 = vmatpush3.bf16.msra.mxu1 %v486_v56  ;;  %v231_v60 = vmax.f32 %v205_v57, 0.0 }
 0x121   :  { %488 = vmatprep.subr.bf16.mxu1 %v522_v2 }
 0x123   :  { %v210_v59 = vpop.f32.mrb[6].mxu0 }
 0x124   :  { %v232_v61 = vmax.f32 %v210_v59, 0.0  ;;  %v426_v62 = vpop.f32.mrb[7].mxu0 }
 0x126   :  { %v489_v63 = vpack.c.bf16 %v232_v61, %v231_v60 }
 0x127   :  { %v215_v0 = vpop.f32.mrb[8].mxu0 }
 0x128   :  { %v429_v1 = vpop.f32.mrb[9].mxu0  ;;  %490 = vmatpush3.bf16.msra.mxu1 %v489_v63  ;;  %v233_v4 = vmax.f32 %v215_v0, 0.0 }
 0x129   :  { %491 = vmatprep.subr.bf16.mxu1 %v522_v2  ;;  %v238_v2 = vstv %s714_s3 }
 0x12b   :  { %v220_v3 = vpop.f32.mrb[10].mxu0 }
 0x12c   :  { %v234_v5 = vmax.f32 %v220_v3, 0.0  ;;  %v432_v6 = vpop.f32.mrb[11].mxu0 }
 0x12e   :  { %v492_v7 = vpack.c.bf16 %v234_v5, %v233_v4 }
 0x12f   :  { %v225_v8 = vpop.f32.mrb[12].mxu0 }
 0x130   :  { %v235_v10 = vmax.f32 %v225_v8, 0.0  ;;  %493 = vmatpush3.bf16.msra.mxu1 %v492_v7  ;;  %v435_v11 = vpop.f32.mrb[13].mxu0 }
 0x131   :  { %448 = vmatprep.subr.mxu1 %v524_v9 }
 0x134   :  { %449 = vmatpush3.msra.mxu1 %v235_v10 }
 0x135   :  { %451 = vmatmul.mubr.msk.f32.vlgmr.msra.gmra.mrb[0].mxu1 %vm239_vm4, %v236_v12 }
 0x208   :  { %v309_v13 = vpop.f32.mrb[0].mxu1 }
 0x209   :  { %v310_v14 = vadd.f32 %v309_v13, %v238_v2  ;;  %v452_v15 = vpop.f32.mrb[1].mxu1 }
 0x20b   :  { %313 = vst [vmem:[#allocation3] sm:$0x1] %v310_v14 }
 0x20c   :  { %509 = shalt.err (!%p506_p4)
}
 0x20d   :  { %s510_s16 = scalar_lea.hbm %s715_s4, 16 }
 0x20e   :  { %p511_p5 = scmp.ne.s32.totalorder %s715_s4, %s510_s16  ;;  %p514_p6 = scmp.lt.u32.totalorder %s510_s16, %s715_s4 }
 0x210   :  { %p516_p7 = pnand %p514_p6, %p511_p5 }
 0x212   :  { %519 = shalt.err (!%p516_p7)
}
 0x213   :  { %323 = dma.vmem_to_hbm [thread:$0]  %s321_s12, 16, %s715_s4, [#allocation4]  }
 0x214   :  { %520 = dma.done.wait [#allocation4], 16  }
 0x215   :  { %521 = vsyncadd [#allocation4], 4294967280 }
 0x216   :  { %327 = vsyncpa [#allocation4], 1 }

</bundles_post_ra>
